<compile_context>
chip_gen: v7x
topology: tpu7x:2x2x1
jax: 0.10.0
libtpu: 0.0.40
codegen_flags: <defaults>
</compile_context>

<pallas_src>
import functools

import jax
import jax.numpy as jnp
from jax.experimental import pallas as pl
from jax.experimental.pallas import tpu as pltpu


# ----------------------------------------------------------------------------
# Helpers
# ----------------------------------------------------------------------------
def _round_up(x, m):
    return ((x + m - 1) // m) * m


def _sublane_align(dtype):
    """Native sublane packing: 8 for 4-byte, 16 for 2-byte, 32 for 1-byte."""
    return {4: 8, 2: 16, 1: 32}.get(jnp.dtype(dtype).itemsize, 8)


def _tile_and_pad(dim, cap, align):
    """Return (tile, padded_dim).

    dim <= cap  -> full-extent block (always legal), no padding.
    dim  > cap  -> prefer an `align`-aligned exact divisor in [cap/2, cap];
                   otherwise the largest aligned tile <= cap and pad `dim`
                   up to a multiple (bounded VMEM, never a full-dim fallback).
    """
    if dim <= cap:
        return dim, dim
    tile = max(align, (cap // align) * align)
    t = tile
    while t >= max(align, tile // 2):
        if dim % t == 0:
            return t, dim
        t -= align
    return tile, _round_up(dim, tile)


def _vmem_limit_bytes():
    """Per-generation scoped-VMEM budget: ~75% of physical, capped at 96 MiB.

    v5e/v6e (128 MiB) -> 96 MiB;  v7x (64 MiB per TC) -> 48 MiB.
    Always above the default scoped limit, always leaves compiler headroom.
    """
    try:
        info = pltpu.get_tpu_info()
        cap = getattr(info, "vmem_capacity_bytes", None) or (64 << 20)
    except Exception:  # pragma: no cover - conservative fallback
        cap = 64 << 20
    return int(min((cap * 3) // 4, 96 << 20))


# ----------------------------------------------------------------------------
# Kernel 1: tiled, pipelined linear  y = x @ w_kn (+ b),  w_kn is (K, N).
#   * RHS is naturally oriented -> pure vmatmul, no XLU transpose per step.
#   * MXU operands cast to `mxu_dtype` (bf16 by default), fp32 accumulation.
#   * If K fits in one tile: 2-D grid, no accumulator scratch, no pl.when.
#     Otherwise: K is the trailing "arbitrary" axis with a fp32 VMEM
#     accumulator and pl.when init/finalize; M/N axes are "parallel" so the
#     grid shards across both TensorCores on v7x.
# ----------------------------------------------------------------------------
def _make_linear_kernel(has_bias, reduce_k, mxu_dtype):
    if not reduce_k:
        def kernel(*refs):
            if has_bias:
                x_ref, w_ref, b_ref, o_ref = refs
            else:
                x_ref, w_ref, o_ref = refs
            acc = jnp.dot(x_ref[...].astype(mxu_dtype), w_ref[...],
                          preferred_element_type=jnp.float32)
            if has_bias:
                acc = acc + b_ref[...].astype(jnp.float32)
            o_ref[...] = acc.astype(o_ref.dtype)
        return kernel

    def kernel(*refs):
        if has_bias:
            x_ref, w_ref, b_ref, o_ref, acc_ref = refs
        else:
            x_ref, w_ref, o_ref, acc_ref = refs

        @pl.when(pl.program_id(2) == 0)
        def _():
            acc_ref[...] = jnp.zeros_like(acc_ref)

        acc_ref[...] += jnp.dot(x_ref[...].astype(mxu_dtype), w_ref[...],
                                preferred_element_type=jnp.float32)

        @pl.when(pl.program_id(2) == pl.num_programs(2) - 1)
        def _():
            r = acc_ref[...]
            if has_bias:
                r = r + b_ref[...].astype(jnp.float32)
            o_ref[...] = r.astype(o_ref.dtype)

    return kernel


def linear(x, w_oi, b=None, *, mxu_dtype=jnp.bfloat16,
           tm_cap=512, tn_cap=512, tk_cap=1024):
    """x: (M, K); w_oi: (N, K) PyTorch layout; b: (1, N) or None -> (M, N)."""
    M, K = x.shape
    N, K2 = w_oi.shape
    assert K == K2
    out_dtype = x.dtype
    if mxu_dtype is None:
        mxu_dtype = x.dtype

    # One-time XLA-level re-layout + cast of the weight: (N, K) -> (K, N).
    w_kn = w_oi.T.astype(mxu_dtype)

    tm, Mp = _tile_and_pad(M, tm_cap, _sublane_align(x.dtype))
    tn, Np = _tile_and_pad(N, tn_cap, 128)
    tk, Kp = _tile_and_pad(K, tk_cap, 128)

    if Mp != M or Kp != K:
        x = jnp.pad(x, ((0, Mp - M), (0, Kp - K)))
    if Kp != K or Np != N:
        w_kn = jnp.pad(w_kn, ((0, Kp - K), (0, Np - N)))
    if b is not None and Np != N:
        b = jnp.pad(b, ((0, 0), (0, Np - N)))

    single_k = (Kp == tk)
    kernel = _make_linear_kernel(b is not None, not single_k, mxu_dtype)

    if single_k:
        grid = (Mp // tm, Np // tn)
        x_spec = pl.BlockSpec((tm, tk), lambda i, j: (i, 0))
        w_spec = pl.BlockSpec((tk, tn), lambda i, j: (0, j))
        b_spec = pl.BlockSpec((1, tn), lambda i, j: (0, j))
        o_spec = pl.BlockSpec((tm, tn), lambda i, j: (i, j))
        dims = ("parallel", "parallel")
        scratch = []
    else:
        grid = (Mp // tm, Np // tn, Kp // tk)
        x_spec = pl.BlockSpec((tm, tk), lambda i, j, k: (i, k))
        w_spec = pl.BlockSpec((tk, tn), lambda i, j, k: (k, j))
        b_spec = pl.BlockSpec((1, tn), lambda i, j, k: (0, j))
        o_spec = pl.BlockSpec((tm, tn), lambda i, j, k: (i, j))
        dims = ("parallel", "parallel", "arbitrary")
        scratch = [pltpu.VMEM((tm, tn), jnp.float32)]

    in_specs = [x_spec, w_spec]
    args = [x, w_kn]
    if b is not None:
        in_specs.append(b_spec)
        args.append(b)

    cost = pl.CostEstimate(
        flops=2 * Mp * Np * Kp,
        transcendentals=0,
        bytes_accessed=int(Mp * Kp * x.dtype.itemsize
                           + Kp * Np * jnp.dtype(mxu_dtype).itemsize
                           + Mp * Np * jnp.dtype(out_dtype).itemsize),
    )

    out = pl.pallas_call(
        kernel,
        out_shape=jax.ShapeDtypeStruct((Mp, Np), out_dtype),
        grid=grid,
        in_specs=in_specs,
        out_specs=o_spec,
        scratch_shapes=scratch,
        compiler_params=pltpu.CompilerParams(
            dimension_semantics=dims,
            vmem_limit_bytes=_vmem_limit_bytes()),
        cost_estimate=cost,
    )(*args)

    if Mp != M or Np != N:
        out = out[:M, :N]
    return out


# ----------------------------------------------------------------------------
# Kernel 2: fused multi-head attention for one batch element.
#   qkv columns are laid out [q_h0..q_hH | k_h0.. | v_h0..] (D per head), so
#   the kernel slices the *ref* per head (zero-cost (N, D) views, no whole
#   (N, 3C) value load / spills).  The softmax scale is folded into q, QK^T
#   uses a transposed contraction, the denominator goes through the EUP
#   reciprocal, and each head's (N, D) result is stored straight into o_ref
#   so live ranges stay short and writeback overlaps later heads' compute.
#   MXU operands are cast to `mxu_dtype` (bf16 by default), fp32 accumulation.
#   attn_drop(0.0) / proj_drop(0.0) are identities and therefore omitted.
# ----------------------------------------------------------------------------
def _attention_kernel(qkv_ref, o_ref, *, num_heads, scale, mxu_dtype):
    n, three_c = qkv_ref.shape
    c = three_c // 3
    d = c // num_heads
    scale_f32 = jnp.asarray(scale, jnp.float32)

    for h in range(num_heads):  # static unroll over heads
        lo, hi = h * d, (h + 1) * d
        # fold the softmax scale into q: one (N, D) VPU mul instead of (N, N).
        q = (qkv_ref[:, lo:hi].astype(jnp.float32) * scale_f32).astype(mxu_dtype)
        k = qkv_ref[:, c + lo: c + hi].astype(mxu_dtype)

        # q @ k^T (the K transpose is inherent to attention scores).
        s = jax.lax.dot_general(q, k, (((1,), (1,)), ((), ())),
                                preferred_element_type=jnp.float32)       # (N, N)
        s = s - jnp.max(s, axis=-1, keepdims=True)
        p = jnp.exp(s)
        denom = jnp.sum(p, axis=-1, keepdims=True)

        v = qkv_ref[:, 2 * c + lo: 2 * c + hi].astype(mxu_dtype)
        o_h = jnp.dot(p.astype(mxu_dtype), v,
                      preferred_element_type=jnp.float32)                 # (N, D)
        # normalize the small (N, D) result with the (near-free) EUP reciprocal.
        o_h = o_h * pl.reciprocal(denom, approx=True)

        # per-head store into the lane-dense (N, C) output block.
        o_ref[:, lo:hi] = o_h.astype(o_ref.dtype)


def attention_core(qkv, num_heads, scale, out_dtype, *, mxu_dtype=jnp.bfloat16):
    """qkv: (B, N, 3C) -> (B, N, C); one program per batch element."""
    B, N, three_c = qkv.shape
    C = three_c // 3
    D = C // num_heads
    if mxu_dtype is None:
        mxu_dtype = qkv.dtype

    # TODO(synk): for long sequences (N >~ 1-2K) add a q-tile grid axis with
    # flash-style online softmax / KV streaming and a (B, head-group) grid so
    # the working set stays under v7x's 64 MiB VMEM and shards across both TCs.
    cost = pl.CostEstimate(
        flops=4 * B * num_heads * N * N * D,                 # QK^T + PV
        transcendentals=B * num_heads * N * (N + 1),         # exp + reciprocal
        bytes_accessed=int(qkv.size * qkv.dtype.itemsize
                           + B * N * C * jnp.dtype(out_dtype).itemsize),
    )

    return pl.pallas_call(
        functools.partial(_attention_kernel, num_heads=num_heads,
                          scale=scale, mxu_dtype=mxu_dtype),
        out_shape=jax.ShapeDtypeStruct((B, N, C), out_dtype),
        grid=(B,),
        in_specs=[pl.BlockSpec((None, N, three_c), lambda b: (b, 0, 0))],
        out_specs=pl.BlockSpec((None, N, C), lambda b: (b, 0, 0)),
        compiler_params=pltpu.CompilerParams(
            dimension_semantics=("parallel",),
            vmem_limit_bytes=_vmem_limit_bytes()),
        cost_estimate=cost,
    )(qkv)


# ----------------------------------------------------------------------------
# Full Attention.forward (no XLA-level activation transposes between calls)
# ----------------------------------------------------------------------------
def attention_forward(x, qkv_w, proj_w, proj_b, num_heads, *,
                      mxu_dtype=jnp.bfloat16):
    """
    x      : (B, N, C)
    qkv_w  : (3C, C)   (PyTorch layout; qkv_bias=False)
    proj_w : (C, C)
    proj_b : (C,)
    mxu_dtype: dtype fed to the MXU (bf16 default; None/float32 for exact f32).
    """
    B, N, C = x.shape
    D = C // num_heads
    scale = D ** (-0.5)

    x_flat = x.reshape(B * N, C)

    # qkv = self.qkv(x) -- bias-free tiled matmul.
    qkv = linear(x_flat, qkv_w, mxu_dtype=mxu_dtype)          # (B*N, 3C)
    qkv = qkv.reshape(B, N, 3 * C)                            # free reshape

    # softmax(q k^T * scale) @ v per (batch, head); written back as (B, N, C).
    out = attention_core(qkv, num_heads, scale, x.dtype, mxu_dtype=mxu_dtype)

    # x = self.proj(x); proj_drop(0.0) is the identity.
    y = linear(out.reshape(B * N, C), proj_w, proj_b.reshape(1, C),
               mxu_dtype=mxu_dtype)
    return y.reshape(B, N, C)


# Pure-JAX reference for validation.
def attention_ref(x, qkv_w, proj_w, proj_b, num_heads):
    B, N, C = x.shape
    D = C // num_heads
    scale = D ** (-0.5)
    qkv = (x.reshape(B * N, C) @ qkv_w.T).reshape(B, N, 3, num_heads, D)
    qkv = jnp.transpose(qkv, (2, 0, 3, 1, 4))
    q, k, v = qkv[0], qkv[1], qkv[2]
    s = jnp.einsum("bhqd,bhkd->bhqk", q, k) * scale
    p = jax.nn.softmax(s, axis=-1)
    o = jnp.einsum("bhqk,bhkd->bhqd", p, v)
    o = jnp.transpose(o, (0, 2, 1, 3)).reshape(B, N, C)
    return o @ proj_w.T + proj_b


if __name__ == "__main__":
    B, N, C, H = 2, 8, 32, 8  # head_dim = 4 (small smoke-test shapes)

    key = jax.random.PRNGKey(0)
    k_x, k_qkv, k_proj, k_bias = jax.random.split(key, 4)

    x = jax.random.normal(k_x, (B, N, C), dtype=jnp.float32)
    qkv_w = jax.random.normal(k_qkv, (3 * C, C), dtype=jnp.float32) * 0.05
    proj_w = jax.random.normal(k_proj, (C, C), dtype=jnp.float32) * 0.05
    proj_b = jax.random.normal(k_bias, (C,), dtype=jnp.float32) * 0.05

    ref = attention_ref(x, qkv_w, proj_w, proj_b, H)

    run_f32 = jax.jit(functools.partial(attention_forward, num_heads=H,
                                        mxu_dtype=jnp.float32))
    run_bf16 = jax.jit(functools.partial(attention_forward, num_heads=H))

    # 1) exact-f32 MXU path: tight check against the f32 reference
    #    (tolerance accounts only for the approx EUP reciprocal in softmax).
    out32 = jax.block_until_ready(run_f32(x, qkv_w, proj_w, proj_b))
    assert out32.shape == (B, N, C)
    assert jnp.allclose(out32, ref, atol=5e-3, rtol=5e-3), \
        float(jnp.max(jnp.abs(out32 - ref)))

    # 2) default fast path (bf16 MXU operands, fp32 accumulation): looser check.
    out16 = jax.block_until_ready(run_bf16(x, qkv_w, proj_w, proj_b))
    assert out16.shape == (B, N, C)
    assert jnp.allclose(out16, ref, atol=5e-2, rtol=5e-2), \
        float(jnp.max(jnp.abs(out16 - ref)))

    print("KERNEL_OK")
</pallas_src>

<mosaic_0001>
module attributes {stable_mosaic.version = 11 : i64} {
  func.func @kernel(%arg0: i32, %arg1: i32, %arg2: memref<16x32xf32, #tpu.memory_space<vmem>>, %arg3: memref<32x32xf32, #tpu.memory_space<vmem>>, %arg4: memref<1x32xf32, #tpu.memory_space<vmem>>, %arg5: memref<16x32xf32, #tpu.memory_space<vmem>>) attributes {dimension_semantics = [#tpu.dimension_semantics<parallel>, #tpu.dimension_semantics<parallel>], iteration_bounds = array<i64: 1, 1>, scalar_prefetch = 0 : i64, scratch_operands = 0 : i64, tpu.core_type = #tpu.core_type<tc>, window_params = [{transform_indices = @transform_0, window_bounds = array<i64: 16, 32>}, {transform_indices = @transform_1, window_bounds = array<i64: 32, 32>}, {transform_indices = @transform_2, window_bounds = array<i64: 1, 32>}, {transform_indices = @transform_3, window_bounds = array<i64: 16, 32>}]} {
    %c0 = arith.constant 0 : index
    %c0_0 = arith.constant 0 : index
    %0 = vector.load %arg2[%c0, %c0_0] : memref<16x32xf32, #tpu.memory_space<vmem>>, vector<16x32xf32>
    %c0_1 = arith.constant 0 : index
    %c0_2 = arith.constant 0 : index
    %1 = vector.load %arg3[%c0_1, %c0_2] : memref<32x32xf32, #tpu.memory_space<vmem>>, vector<32x32xf32>
    %cst = arith.constant dense<0.000000e+00> : vector<16x32xf32>
    %2 = tpu.matmul %0, %1, %cst {dimension_numbers = #tpu.dot_dimension_numbers<[1], [0], [0], [1], [0, 0, 1, 1], [], []>} : vector<16x32xf32>, vector<32x32xf32>, vector<16x32xf32> -> vector<16x32xf32>
    %c0_3 = arith.constant 0 : index
    %c0_4 = arith.constant 0 : index
    %3 = vector.load %arg4[%c0_3, %c0_4] : memref<1x32xf32, #tpu.memory_space<vmem>>, vector<1x32xf32>
    %4 = vector.broadcast %3 : vector<1x32xf32> to vector<16x32xf32>
    %5 = arith.addf %2, %4 : vector<16x32xf32>
    %c0_5 = arith.constant 0 : index
    %c0_6 = arith.constant 0 : index
    %6 = vector.load %arg5[%c0_5, %c0_6] : memref<16x32xf32, #tpu.memory_space<vmem>>, vector<16x32xf32>
    tpu.vector_store %arg5[%c0_5, %c0_6], %5 {strides = array<i32>} : memref<16x32xf32, #tpu.memory_space<vmem>>, vector<16x32xf32>,
    return
  }
  func.func @transform_0(%arg0: i32, %arg1: i32) -> (i32, i32) {
    %c0_i32 = arith.constant 0 : i32
    %c0_i32_0 = arith.constant 0 : i32
    return %arg0, %c0_i32 : i32, i32
  }
  func.func @transform_1(%arg0: i32, %arg1: i32) -> (i32, i32) {
    %c0_i32 = arith.constant 0 : i32
    %c0_i32_0 = arith.constant 0 : i32
    return %c0_i32, %arg1 : i32, i32
  }
  func.func @transform_2(%arg0: i32, %arg1: i32) -> (i32, i32) {
    %c0_i32 = arith.constant 0 : i32
    %c0_i32_0 = arith.constant 0 : i32
    return %c0_i32, %arg1 : i32, i32
  }
  func.func @transform_3(%arg0: i32, %arg1: i32) -> (i32, i32) {
    %c0_i32 = arith.constant 0 : i32
    return %arg0, %arg1 : i32, i32
  }
}

module attributes {stable_mosaic.version = 11 : i64} {
  func.func @kernel(%arg0: i32, %arg1: i32, %arg2: memref<16x32xf32, #tpu.memory_space<vmem>>, %arg3: memref<32x96xf32, #tpu.memory_space<vmem>>, %arg4: memref<16x96xf32, #tpu.memory_space<vmem>>) attributes {dimension_semantics = [#tpu.dimension_semantics<parallel>, #tpu.dimension_semantics<parallel>], iteration_bounds = array<i64: 1, 1>, scalar_prefetch = 0 : i64, scratch_operands = 0 : i64, tpu.core_type = #tpu.core_type<tc>, window_params = [{transform_indices = @transform_0, window_bounds = array<i64: 16, 32>}, {transform_indices = @transform_1, window_bounds = array<i64: 32, 96>}, {transform_indices = @transform_2, window_bounds = array<i64: 16, 96>}]} {
    %c0 = arith.constant 0 : index
    %c0_0 = arith.constant 0 : index
    %0 = vector.load %arg2[%c0, %c0_0] : memref<16x32xf32, #tpu.memory_space<vmem>>, vector<16x32xf32>
    %c0_1 = arith.constant 0 : index
    %c0_2 = arith.constant 0 : index
    %1 = vector.load %arg3[%c0_1, %c0_2] : memref<32x96xf32, #tpu.memory_space<vmem>>, vector<32x96xf32>
    %cst = arith.constant dense<0.000000e+00> : vector<16x96xf32>
    %2 = tpu.matmul %0, %1, %cst {dimension_numbers = #tpu.dot_dimension_numbers<[1], [0], [0], [1], [0, 0, 1, 1], [], []>} : vector<16x32xf32>, vector<32x96xf32>, vector<16x96xf32> -> vector<16x96xf32>
    %c0_3 = arith.constant 0 : index
    %c0_4 = arith.constant 0 : index
    %3 = vector.load %arg4[%c0_3, %c0_4] : memref<16x96xf32, #tpu.memory_space<vmem>>, vector<16x96xf32>
    tpu.vector_store %arg4[%c0_3, %c0_4], %2 {strides = array<i32>} : memref<16x96xf32, #tpu.memory_space<vmem>>, vector<16x96xf32>,
    return
  }
  func.func @transform_0(%arg0: i32, %arg1: i32) -> (i32, i32) {
    %c0_i32 = arith.constant 0 : i32
    %c0_i32_0 = arith.constant 0 : i32
    return %arg0, %c0_i32 : i32, i32
  }
  func.func @transform_1(%arg0: i32, %arg1: i32) -> (i32, i32) {
    %c0_i32 = arith.constant 0 : i32
    %c0_i32_0 = arith.constant 0 : i32
    return %c0_i32, %arg1 : i32, i32
  }
  func.func @transform_2(%arg0: i32, %arg1: i32) -> (i32, i32) {
    %c0_i32 = arith.constant 0 : i32
    return %arg0, %arg1 : i32, i32
  }
}

module attributes {stable_mosaic.version = 11 : i64} {
  func.func @_attention_kernel(%arg0: i32, %arg1: memref<1x8x96xf32, #tpu.memory_space<vmem>>, %arg2: memref<1x8x32xf32, #tpu.memory_space<vmem>>) attributes {dimension_semantics = [#tpu.dimension_semantics<parallel>], iteration_bounds = array<i64: 2>, scalar_prefetch = 0 : i64, scratch_operands = 0 : i64, tpu.core_type = #tpu.core_type<tc>, window_params = [{transform_indices = @transform_0, window_bounds = array<i64: 1, 8, 96>}, {transform_indices = @transform_1, window_bounds = array<i64: 1, 8, 32>}]} {
    %c0 = arith.constant 0 : index
    %c0_0 = arith.constant 0 : index
    %c0_1 = arith.constant 0 : index
    %0 = vector.load %arg1[%c0, %c0_0, %c0_1] : memref<1x8x96xf32, #tpu.memory_space<vmem>>, vector<1x8x4xf32>
    %1 = vector.shape_cast %0 : vector<1x8x4xf32> to vector<8x4xf32>
    %cst = arith.constant 5.000000e-01 : f32
    %2 = vector.broadcast %cst : f32 to vector<8x4xf32>
    %3 = arith.mulf %1, %2 : vector<8x4xf32>
    %c0_2 = arith.constant 0 : index
    %c0_3 = arith.constant 0 : index
    %c32 = arith.constant 32 : index
    %4 = vector.load %arg1[%c0_2, %c0_3, %c32] : memref<1x8x96xf32, #tpu.memory_space<vmem>>, vector<1x8x4xf32>
    %5 = vector.shape_cast %4 : vector<1x8x4xf32> to vector<8x4xf32>
    %cst_4 = arith.constant dense<0.000000e+00> : vector<8x8xf32>
    %6 = tpu.matmul %3, %5, %cst_4 {dimension_numbers = #tpu.dot_dimension_numbers<[1], [1], [0], [0], [0, 0, 1, 0], [], []>} : vector<8x4xf32>, vector<8x4xf32>, vector<8x8xf32> -> vector<8x8xf32>
    %cst_5 = arith.constant dense<0xFF800000> : vector<8xf32>
    %7 = vector.multi_reduction <maximumf>, %6, %cst_5 [1] : vector<8x8xf32> to vector<8xf32>
    %8 = vector.shape_cast %7 : vector<8xf32> to vector<8x1xf32>
    %9 = vector.broadcast %8 : vector<8x1xf32> to vector<8x8xf32>
    %10 = arith.subf %6, %9 : vector<8x8xf32>
    %11 = math.exp %10 : vector<8x8xf32>
    %cst_6 = arith.constant dense<0.000000e+00> : vector<8xf32>
    %12 = vector.multi_reduction <add>, %11, %cst_6 [1] : vector<8x8xf32> to vector<8xf32>
    %13 = vector.shape_cast %12 : vector<8xf32> to vector<8x1xf32>
    %c0_7 = arith.constant 0 : index
    %c0_8 = arith.constant 0 : index
    %c64 = arith.constant 64 : index
    %14 = vector.load %arg1[%c0_7, %c0_8, %c64] : memref<1x8x96xf32, #tpu.memory_space<vmem>>, vector<1x8x4xf32>
    %15 = vector.shape_cast %14 : vector<1x8x4xf32> to vector<8x4xf32>
    %cst_9 = arith.constant dense<0.000000e+00> : vector<8x4xf32>
    %16 = tpu.matmul %11, %15, %cst_9 {dimension_numbers = #tpu.dot_dimension_numbers<[1], [0], [0], [1], [0, 0, 1, 1], [], []>} : vector<8x8xf32>, vector<8x4xf32>, vector<8x4xf32> -> vector<8x4xf32>
    %17 = tpu.reciprocal %13 {approx = true} : vector<8x1xf32> -> vector<8x1xf32>
    %18 = vector.broadcast %17 : vector<8x1xf32> to vector<8x4xf32>
    %19 = arith.mulf %16, %18 : vector<8x4xf32>
    %c0_10 = arith.constant 0 : index
    %c0_11 = arith.constant 0 : index
    %c0_12 = arith.constant 0 : index
    %20 = vector.load %arg2[%c0_10, %c0_11, %c0_12] : memref<1x8x32xf32, #tpu.memory_space<vmem>>, vector<1x8x4xf32>
    %21 = vector.shape_cast %20 : vector<1x8x4xf32> to vector<8x4xf32>
    %22 = vector.shape_cast %19 : vector<8x4xf32> to vector<1x8x4xf32>
    tpu.vector_store %arg2[%c0_10, %c0_11, %c0_12], %22 {strides = array<i32>} : memref<1x8x32xf32, #tpu.memory_space<vmem>>, vector<1x8x4xf32>,
    %c0_13 = arith.constant 0 : index
    %c0_14 = arith.constant 0 : index
    %c4 = arith.constant 4 : index
    %23 = vector.load %arg1[%c0_13, %c0_14, %c4] : memref<1x8x96xf32, #tpu.memory_space<vmem>>, vector<1x8x4xf32>
    %24 = vector.shape_cast %23 : vector<1x8x4xf32> to vector<8x4xf32>
    %cst_15 = arith.constant 5.000000e-01 : f32
    %25 = vector.broadcast %cst_15 : f32 to vector<8x4xf32>
    %26 = arith.mulf %24, %25 : vector<8x4xf32>
    %c0_16 = arith.constant 0 : index
    %c0_17 = arith.constant 0 : index
    %c36 = arith.constant 36 : index
    %27 = vector.load %arg1[%c0_16, %c0_17, %c36] : memref<1x8x96xf32, #tpu.memory_space<vmem>>, vector<1x8x4xf32>
    %28 = vector.shape_cast %27 : vector<1x8x4xf32> to vector<8x4xf32>
    %cst_18 = arith.constant dense<0.000000e+00> : vector<8x8xf32>
    %29 = tpu.matmul %26, %28, %cst_18 {dimension_numbers = #tpu.dot_dimension_numbers<[1], [1], [0], [0], [0, 0, 1, 0], [], []>} : vector<8x4xf32>, vector<8x4xf32>, vector<8x8xf32> -> vector<8x8xf32>
    %cst_19 = arith.constant dense<0xFF800000> : vector<8xf32>
    %30 = vector.multi_reduction <maximumf>, %29, %cst_19 [1] : vector<8x8xf32> to vector<8xf32>
    %31 = vector.shape_cast %30 : vector<8xf32> to vector<8x1xf32>
    %32 = vector.broadcast %31 : vector<8x1xf32> to vector<8x8xf32>
    %33 = arith.subf %29, %32 : vector<8x8xf32>
    %34 = math.exp %33 : vector<8x8xf32>
    %cst_20 = arith.constant dense<0.000000e+00> : vector<8xf32>
    %35 = vector.multi_reduction <add>, %34, %cst_20 [1] : vector<8x8xf32> to vector<8xf32>
    %36 = vector.shape_cast %35 : vector<8xf32> to vector<8x1xf32>
    %c0_21 = arith.constant 0 : index
    %c0_22 = arith.constant 0 : index
    %c68 = arith.constant 68 : index
    %37 = vector.load %arg1[%c0_21, %c0_22, %c68] : memref<1x8x96xf32, #tpu.memory_space<vmem>>, vector<1x8x4xf32>
    %38 = vector.shape_cast %37 : vector<1x8x4xf32> to vector<8x4xf32>
    %cst_23 = arith.constant dense<0.000000e+00> : vector<8x4xf32>
    %39 = tpu.matmul %34, %38, %cst_23 {dimension_numbers = #tpu.dot_dimension_numbers<[1], [0], [0], [1], [0, 0, 1, 1], [], []>} : vector<8x8xf32>, vector<8x4xf32>, vector<8x4xf32> -> vector<8x4xf32>
    %40 = tpu.reciprocal %36 {approx = true} : vector<8x1xf32> -> vector<8x1xf32>
    %41 = vector.broadcast %40 : vector<8x1xf32> to vector<8x4xf32>
    %42 = arith.mulf %39, %41 : vector<8x4xf32>
    %c0_24 = arith.constant 0 : index
    %c0_25 = arith.constant 0 : index
    %c4_26 = arith.constant 4 : index
    %43 = vector.load %arg2[%c0_24, %c0_25, %c4_26] : memref<1x8x32xf32, #tpu.memory_space<vmem>>, vector<1x8x4xf32>
    %44 = vector.shape_cast %43 : vector<1x8x4xf32> to vector<8x4xf32>
    %45 = vector.shape_cast %42 : vector<8x4xf32> to vector<1x8x4xf32>
    tpu.vector_store %arg2[%c0_24, %c0_25, %c4_26], %45 {strides = array<i32>} : memref<1x8x32xf32, #tpu.memory_space<vmem>>, vector<1x8x4xf32>,
    %c0_27 = arith.constant 0 : index
    %c0_28 = arith.constant 0 : index
    %c8 = arith.constant 8 : index
    %46 = vector.load %arg1[%c0_27, %c0_28, %c8] : memref<1x8x96xf32, #tpu.memory_space<vmem>>, vector<1x8x4xf32>
    %47 = vector.shape_cast %46 : vector<1x8x4xf32> to vector<8x4xf32>
    %cst_29 = arith.constant 5.000000e-01 : f32
    %48 = vector.broadcast %cst_29 : f32 to vector<8x4xf32>
    %49 = arith.mulf %47, %48 : vector<8x4xf32>
    %c0_30 = arith.constant 0 : index
    %c0_31 = arith.constant 0 : index
    %c40 = arith.constant 40 : index
    %50 = vector.load %arg1[%c0_30, %c0_31, %c40] : memref<1x8x96xf32, #tpu.memory_space<vmem>>, vector<1x8x4xf32>
    %51 = vector.shape_cast %50 : vector<1x8x4xf32> to vector<8x4xf32>
    %cst_32 = arith.constant dense<0.000000e+00> : vector<8x8xf32>
    %52 = tpu.matmul %49, %51, %cst_32 {dimension_numbers = #tpu.dot_dimension_numbers<[1], [1], [0], [0], [0, 0, 1, 0], [], []>} : vector<8x4xf32>, vector<8x4xf32>, vector<8x8xf32> -> vector<8x8xf32>
    %cst_33 = arith.constant dense<0xFF800000> : vector<8xf32>
    %53 = vector.multi_reduction <maximumf>, %52, %cst_33 [1] : vector<8x8xf32> to vector<8xf32>
    %54 = vector.shape_cast %53 : vector<8xf32> to vector<8x1xf32>
    %55 = vector.broadcast %54 : vector<8x1xf32> to vector<8x8xf32>
    %56 = arith.subf %52, %55 : vector<8x8xf32>
    %57 = math.exp %56 : vector<8x8xf32>
    %cst_34 = arith.constant dense<0.000000e+00> : vector<8xf32>
    %58 = vector.multi_reduction <add>, %57, %cst_34 [1] : vector<8x8xf32> to vector<8xf32>
    %59 = vector.shape_cast %58 : vector<8xf32> to vector<8x1xf32>
    %c0_35 = arith.constant 0 : index
    %c0_36 = arith.constant 0 : index
    %c72 = arith.constant 72 : index
    %60 = vector.load %arg1[%c0_35, %c0_36, %c72] : memref<1x8x96xf32, #tpu.memory_space<vmem>>, vector<1x8x4xf32>
    %61 = vector.shape_cast %60 : vector<1x8x4xf32> to vector<8x4xf32>
    %cst_37 = arith.constant dense<0.000000e+00> : vector<8x4xf32>
    %62 = tpu.matmul %57, %61, %cst_37 {dimension_numbers = #tpu.dot_dimension_numbers<[1], [0], [0], [1], [0, 0, 1, 1], [], []>} : vector<8x8xf32>, vector<8x4xf32>, vector<8x4xf32> -> vector<8x4xf32>
    %63 = tpu.reciprocal %59 {approx = true} : vector<8x1xf32> -> vector<8x1xf32>
    %64 = vector.broadcast %63 : vector<8x1xf32> to vector<8x4xf32>
    %65 = arith.mulf %62, %64 : vector<8x4xf32>
    %c0_38 = arith.constant 0 : index
    %c0_39 = arith.constant 0 : index
    %c8_40 = arith.constant 8 : index
    %66 = vector.load %arg2[%c0_38, %c0_39, %c8_40] : memref<1x8x32xf32, #tpu.memory_space<vmem>>, vector<1x8x4xf32>
    %67 = vector.shape_cast %66 : vector<1x8x4xf32> to vector<8x4xf32>
    %68 = vector.shape_cast %65 : vector<8x4xf32> to vector<1x8x4xf32>
    tpu.vector_store %arg2[%c0_38, %c0_39, %c8_40], %68 {strides = array<i32>} : memref<1x8x32xf32, #tpu.memory_space<vmem>>, vector<1x8x4xf32>,
    %c0_41 = arith.constant 0 : index
    %c0_42 = arith.constant 0 : index
    %c12 = arith.constant 12 : index
    %69 = vector.load %arg1[%c0_41, %c0_42, %c12] : memref<1x8x96xf32, #tpu.memory_space<vmem>>, vector<1x8x4xf32>
    %70 = vector.shape_cast %69 : vector<1x8x4xf32> to vector<8x4xf32>
    %cst_43 = arith.constant 5.000000e-01 : f32
    %71 = vector.broadcast %cst_43 : f32 to vector<8x4xf32>
    %72 = arith.mulf %70, %71 : vector<8x4xf32>
    %c0_44 = arith.constant 0 : index
    %c0_45 = arith.constant 0 : index
    %c44 = arith.constant 44 : index
    %73 = vector.load %arg1[%c0_44, %c0_45, %c44] : memref<1x8x96xf32, #tpu.memory_space<vmem>>, vector<1x8x4xf32>
    %74 = vector.shape_cast %73 : vector<1x8x4xf32> to vector<8x4xf32>
    %cst_46 = arith.constant dense<0.000000e+00> : vector<8x8xf32>
    %75 = tpu.matmul %72, %74, %cst_46 {dimension_numbers = #tpu.dot_dimension_numbers<[1], [1], [0], [0], [0, 0, 1, 0], [], []>} : vector<8x4xf32>, vector<8x4xf32>, vector<8x8xf32> -> vector<8x8xf32>
    %cst_47 = arith.constant dense<0xFF800000> : vector<8xf32>
    %76 = vector.multi_reduction <maximumf>, %75, %cst_47 [1] : vector<8x8xf32> to vector<8xf32>
    %77 = vector.shape_cast %76 : vector<8xf32> to vector<8x1xf32>
    %78 = vector.broadcast %77 : vector<8x1xf32> to vector<8x8xf32>
    %79 = arith.subf %75, %78 : vector<8x8xf32>
    %80 = math.exp %79 : vector<8x8xf32>
    %cst_48 = arith.constant dense<0.000000e+00> : vector<8xf32>
    %81 = vector.multi_reduction <add>, %80, %cst_48 [1] : vector<8x8xf32> to vector<8xf32>
    %82 = vector.shape_cast %81 : vector<8xf32> to vector<8x1xf32>
    %c0_49 = arith.constant 0 : index
    %c0_50 = arith.constant 0 : index
    %c76 = arith.constant 76 : index
    %83 = vector.load %arg1[%c0_49, %c0_50, %c76] : memref<1x8x96xf32, #tpu.memory_space<vmem>>, vector<1x8x4xf32>
    %84 = vector.shape_cast %83 : vector<1x8x4xf32> to vector<8x4xf32>
    %cst_51 = arith.constant dense<0.000000e+00> : vector<8x4xf32>
    %85 = tpu.matmul %80, %84, %cst_51 {dimension_numbers = #tpu.dot_dimension_numbers<[1], [0], [0], [1], [0, 0, 1, 1], [], []>} : vector<8x8xf32>, vector<8x4xf32>, vector<8x4xf32> -> vector<8x4xf32>
    %86 = tpu.reciprocal %82 {approx = true} : vector<8x1xf32> -> vector<8x1xf32>
    %87 = vector.broadcast %86 : vector<8x1xf32> to vector<8x4xf32>
    %88 = arith.mulf %85, %87 : vector<8x4xf32>
    %c0_52 = arith.constant 0 : index
    %c0_53 = arith.constant 0 : index
    %c12_54 = arith.constant 12 : index
    %89 = vector.load %arg2[%c0_52, %c0_53, %c12_54] : memref<1x8x32xf32, #tpu.memory_space<vmem>>, vector<1x8x4xf32>
    %90 = vector.shape_cast %89 : vector<1x8x4xf32> to vector<8x4xf32>
    %91 = vector.shape_cast %88 : vector<8x4xf32> to vector<1x8x4xf32>
    tpu.vector_store %arg2[%c0_52, %c0_53, %c12_54], %91 {strides = array<i32>} : memref<1x8x32xf32, #tpu.memory_space<vmem>>, vector<1x8x4xf32>,
    %c0_55 = arith.constant 0 : index
    %c0_56 = arith.constant 0 : index
    %c16 = arith.constant 16 : index
    %92 = vector.load %arg1[%c0_55, %c0_56, %c16] : memref<1x8x96xf32, #tpu.memory_space<vmem>>, vector<1x8x4xf32>
    %93 = vector.shape_cast %92 : vector<1x8x4xf32> to vector<8x4xf32>
    %cst_57 = arith.constant 5.000000e-01 : f32
    %94 = vector.broadcast %cst_57 : f32 to vector<8x4xf32>
    %95 = arith.mulf %93, %94 : vector<8x4xf32>
    %c0_58 = arith.constant 0 : index
    %c0_59 = arith.constant 0 : index
    %c48 = arith.constant 48 : index
    %96 = vector.load %arg1[%c0_58, %c0_59, %c48] : memref<1x8x96xf32, #tpu.memory_space<vmem>>, vector<1x8x4xf32>
    %97 = vector.shape_cast %96 : vector<1x8x4xf32> to vector<8x4xf32>
    %cst_60 = arith.constant dense<0.000000e+00> : vector<8x8xf32>
    %98 = tpu.matmul %95, %97, %cst_60 {dimension_numbers = #tpu.dot_dimension_numbers<[1], [1], [0], [0], [0, 0, 1, 0], [], []>} : vector<8x4xf32>, vector<8x4xf32>, vector<8x8xf32> -> vector<8x8xf32>
    %cst_61 = arith.constant dense<0xFF800000> : vector<8xf32>
    %99 = vector.multi_reduction <maximumf>, %98, %cst_61 [1] : vector<8x8xf32> to vector<8xf32>
    %100 = vector.shape_cast %99 : vector<8xf32> to vector<8x1xf32>
    %101 = vector.broadcast %100 : vector<8x1xf32> to vector<8x8xf32>
    %102 = arith.subf %98, %101 : vector<8x8xf32>
    %103 = math.exp %102 : vector<8x8xf32>
    %cst_62 = arith.constant dense<0.000000e+00> : vector<8xf32>
    %104 = vector.multi_reduction <add>, %103, %cst_62 [1] : vector<8x8xf32> to vector<8xf32>
    %105 = vector.shape_cast %104 : vector<8xf32> to vector<8x1xf32>
    %c0_63 = arith.constant 0 : index
    %c0_64 = arith.constant 0 : index
    %c80 = arith.constant 80 : index
    %106 = vector.load %arg1[%c0_63, %c0_64, %c80] : memref<1x8x96xf32, #tpu.memory_space<vmem>>, vector<1x8x4xf32>
    %107 = vector.shape_cast %106 : vector<1x8x4xf32> to vector<8x4xf32>
    %cst_65 = arith.constant dense<0.000000e+00> : vector<8x4xf32>
    %108 = tpu.matmul %103, %107, %cst_65 {dimension_numbers = #tpu.dot_dimension_numbers<[1], [0], [0], [1], [0, 0, 1, 1], [], []>} : vector<8x8xf32>, vector<8x4xf32>, vector<8x4xf32> -> vector<8x4xf32>
    %109 = tpu.reciprocal %105 {approx = true} : vector<8x1xf32> -> vector<8x1xf32>
    %110 = vector.broadcast %109 : vector<8x1xf32> to vector<8x4xf32>
    %111 = arith.mulf %108, %110 : vector<8x4xf32>
    %c0_66 = arith.constant 0 : index
    %c0_67 = arith.constant 0 : index
    %c16_68 = arith.constant 16 : index
    %112 = vector.load %arg2[%c0_66, %c0_67, %c16_68] : memref<1x8x32xf32, #tpu.memory_space<vmem>>, vector<1x8x4xf32>
    %113 = vector.shape_cast %112 : vector<1x8x4xf32> to vector<8x4xf32>
    %114 = vector.shape_cast %111 : vector<8x4xf32> to vector<1x8x4xf32>
    tpu.vector_store %arg2[%c0_66, %c0_67, %c16_68], %114 {strides = array<i32>} : memref<1x8x32xf32, #tpu.memory_space<vmem>>, vector<1x8x4xf32>,
    %c0_69 = arith.constant 0 : index
    %c0_70 = arith.constant 0 : index
    %c20 = arith.constant 20 : index
    %115 = vector.load %arg1[%c0_69, %c0_70, %c20] : memref<1x8x96xf32, #tpu.memory_space<vmem>>, vector<1x8x4xf32>
    %116 = vector.shape_cast %115 : vector<1x8x4xf32> to vector<8x4xf32>
    %cst_71 = arith.constant 5.000000e-01 : f32
    %117 = vector.broadcast %cst_71 : f32 to vector<8x4xf32>
    %118 = arith.mulf %116, %117 : vector<8x4xf32>
    %c0_72 = arith.constant 0 : index
    %c0_73 = arith.constant 0 : index
    %c52 = arith.constant 52 : index
    %119 = vector.load %arg1[%c0_72, %c0_73, %c52] : memref<1x8x96xf32, #tpu.memory_space<vmem>>, vector<1x8x4xf32>
    %120 = vector.shape_cast %119 : vector<1x8x4xf32> to vector<8x4xf32>
    %cst_74 = arith.constant dense<0.000000e+00> : vector<8x8xf32>
    %121 = tpu.matmul %118, %120, %cst_74 {dimension_numbers = #tpu.dot_dimension_numbers<[1], [1], [0], [0], [0, 0, 1, 0], [], []>} : vector<8x4xf32>, vector<8x4xf32>, vector<8x8xf32> -> vector<8x8xf32>
    %cst_75 = arith.constant dense<0xFF800000> : vector<8xf32>
    %122 = vector.multi_reduction <maximumf>, %121, %cst_75 [1] : vector<8x8xf32> to vector<8xf32>
    %123 = vector.shape_cast %122 : vector<8xf32> to vector<8x1xf32>
    %124 = vector.broadcast %123 : vector<8x1xf32> to vector<8x8xf32>
    %125 = arith.subf %121, %124 : vector<8x8xf32>
    %126 = math.exp %125 : vector<8x8xf32>
    %cst_76 = arith.constant dense<0.000000e+00> : vector<8xf32>
    %127 = vector.multi_reduction <add>, %126, %cst_76 [1] : vector<8x8xf32> to vector<8xf32>
    %128 = vector.shape_cast %127 : vector<8xf32> to vector<8x1xf32>
    %c0_77 = arith.constant 0 : index
    %c0_78 = arith.constant 0 : index
    %c84 = arith.constant 84 : index
    %129 = vector.load %arg1[%c0_77, %c0_78, %c84] : memref<1x8x96xf32, #tpu.memory_space<vmem>>, vector<1x8x4xf32>
    %130 = vector.shape_cast %129 : vector<1x8x4xf32> to vector<8x4xf32>
    %cst_79 = arith.constant dense<0.000000e+00> : vector<8x4xf32>
    %131 = tpu.matmul %126, %130, %cst_79 {dimension_numbers = #tpu.dot_dimension_numbers<[1], [0], [0], [1], [0, 0, 1, 1], [], []>} : vector<8x8xf32>, vector<8x4xf32>, vector<8x4xf32> -> vector<8x4xf32>
    %132 = tpu.reciprocal %128 {approx = true} : vector<8x1xf32> -> vector<8x1xf32>
    %133 = vector.broadcast %132 : vector<8x1xf32> to vector<8x4xf32>
    %134 = arith.mulf %131, %133 : vector<8x4xf32>
    %c0_80 = arith.constant 0 : index
    %c0_81 = arith.constant 0 : index
    %c20_82 = arith.constant 20 : index
    %135 = vector.load %arg2[%c0_80, %c0_81, %c20_82] : memref<1x8x32xf32, #tpu.memory_space<vmem>>, vector<1x8x4xf32>
    %136 = vector.shape_cast %135 : vector<1x8x4xf32> to vector<8x4xf32>
    %137 = vector.shape_cast %134 : vector<8x4xf32> to vector<1x8x4xf32>
    tpu.vector_store %arg2[%c0_80, %c0_81, %c20_82], %137 {strides = array<i32>} : memref<1x8x32xf32, #tpu.memory_space<vmem>>, vector<1x8x4xf32>,
    %c0_83 = arith.constant 0 : index
    %c0_84 = arith.constant 0 : index
    %c24 = arith.constant 24 : index
    %138 = vector.load %arg1[%c0_83, %c0_84, %c24] : memref<1x8x96xf32, #tpu.memory_space<vmem>>, vector<1x8x4xf32>
    %139 = vector.shape_cast %138 : vector<1x8x4xf32> to vector<8x4xf32>
    %cst_85 = arith.constant 5.000000e-01 : f32
    %140 = vector.broadcast %cst_85 : f32 to vector<8x4xf32>
    %141 = arith.mulf %139, %140 : vector<8x4xf32>
    %c0_86 = arith.constant 0 : index
    %c0_87 = arith.constant 0 : index
    %c56 = arith.constant 56 : index
    %142 = vector.load %arg1[%c0_86, %c0_87, %c56] : memref<1x8x96xf32, #tpu.memory_space<vmem>>, vector<1x8x4xf32>
    %143 = vector.shape_cast %142 : vector<1x8x4xf32> to vector<8x4xf32>
    %cst_88 = arith.constant dense<0.000000e+00> : vector<8x8xf32>
    %144 = tpu.matmul %141, %143, %cst_88 {dimension_numbers = #tpu.dot_dimension_numbers<[1], [1], [0], [0], [0, 0, 1, 0], [], []>} : vector<8x4xf32>, vector<8x4xf32>, vector<8x8xf32> -> vector<8x8xf32>
    %cst_89 = arith.constant dense<0xFF800000> : vector<8xf32>
    %145 = vector.multi_reduction <maximumf>, %144, %cst_89 [1] : vector<8x8xf32> to vector<8xf32>
    %146 = vector.shape_cast %145 : vector<8xf32> to vector<8x1xf32>
    %147 = vector.broadcast %146 : vector<8x1xf32> to vector<8x8xf32>
    %148 = arith.subf %144, %147 : vector<8x8xf32>
    %149 = math.exp %148 : vector<8x8xf32>
    %cst_90 = arith.constant dense<0.000000e+00> : vector<8xf32>
    %150 = vector.multi_reduction <add>, %149, %cst_90 [1] : vector<8x8xf32> to vector<8xf32>
    %151 = vector.shape_cast %150 : vector<8xf32> to vector<8x1xf32>
    %c0_91 = arith.constant 0 : index
    %c0_92 = arith.constant 0 : index
    %c88 = arith.constant 88 : index
    %152 = vector.load %arg1[%c0_91, %c0_92, %c88] : memref<1x8x96xf32, #tpu.memory_space<vmem>>, vector<1x8x4xf32>
    %153 = vector.shape_cast %152 : vector<1x8x4xf32> to vector<8x4xf32>
    %cst_93 = arith.constant dense<0.000000e+00> : vector<8x4xf32>
    %154 = tpu.matmul %149, %153, %cst_93 {dimension_numbers = #tpu.dot_dimension_numbers<[1], [0], [0], [1], [0, 0, 1, 1], [], []>} : vector<8x8xf32>, vector<8x4xf32>, vector<8x4xf32> -> vector<8x4xf32>
    %155 = tpu.reciprocal %151 {approx = true} : vector<8x1xf32> -> vector<8x1xf32>
    %156 = vector.broadcast %155 : vector<8x1xf32> to vector<8x4xf32>
    %157 = arith.mulf %154, %156 : vector<8x4xf32>
    %c0_94 = arith.constant 0 : index
    %c0_95 = arith.constant 0 : index
    %c24_96 = arith.constant 24 : index
    %158 = vector.load %arg2[%c0_94, %c0_95, %c24_96] : memref<1x8x32xf32, #tpu.memory_space<vmem>>, vector<1x8x4xf32>
    %159 = vector.shape_cast %158 : vector<1x8x4xf32> to vector<8x4xf32>
    %160 = vector.shape_cast %157 : vector<8x4xf32> to vector<1x8x4xf32>
    tpu.vector_store %arg2[%c0_94, %c0_95, %c24_96], %160 {strides = array<i32>} : memref<1x8x32xf32, #tpu.memory_space<vmem>>, vector<1x8x4xf32>,
    %c0_97 = arith.constant 0 : index
    %c0_98 = arith.constant 0 : index
    %c28 = arith.constant 28 : index
    %161 = vector.load %arg1[%c0_97, %c0_98, %c28] : memref<1x8x96xf32, #tpu.memory_space<vmem>>, vector<1x8x4xf32>
    %162 = vector.shape_cast %161 : vector<1x8x4xf32> to vector<8x4xf32>
    %cst_99 = arith.constant 5.000000e-01 : f32
    %163 = vector.broadcast %cst_99 : f32 to vector<8x4xf32>
    %164 = arith.mulf %162, %163 : vector<8x4xf32>
    %c0_100 = arith.constant 0 : index
    %c0_101 = arith.constant 0 : index
    %c60 = arith.constant 60 : index
    %165 = vector.load %arg1[%c0_100, %c0_101, %c60] : memref<1x8x96xf32, #tpu.memory_space<vmem>>, vector<1x8x4xf32>
    %166 = vector.shape_cast %165 : vector<1x8x4xf32> to vector<8x4xf32>
    %cst_102 = arith.constant dense<0.000000e+00> : vector<8x8xf32>
    %167 = tpu.matmul %164, %166, %cst_102 {dimension_numbers = #tpu.dot_dimension_numbers<[1], [1], [0], [0], [0, 0, 1, 0], [], []>} : vector<8x4xf32>, vector<8x4xf32>, vector<8x8xf32> -> vector<8x8xf32>
    %cst_103 = arith.constant dense<0xFF800000> : vector<8xf32>
    %168 = vector.multi_reduction <maximumf>, %167, %cst_103 [1] : vector<8x8xf32> to vector<8xf32>
    %169 = vector.shape_cast %168 : vector<8xf32> to vector<8x1xf32>
    %170 = vector.broadcast %169 : vector<8x1xf32> to vector<8x8xf32>
    %171 = arith.subf %167, %170 : vector<8x8xf32>
    %172 = math.exp %171 : vector<8x8xf32>
    %cst_104 = arith.constant dense<0.000000e+00> : vector<8xf32>
    %173 = vector.multi_reduction <add>, %172, %cst_104 [1] : vector<8x8xf32> to vector<8xf32>
    %174 = vector.shape_cast %173 : vector<8xf32> to vector<8x1xf32>
    %c0_105 = arith.constant 0 : index
    %c0_106 = arith.constant 0 : index
    %c92 = arith.constant 92 : index
    %175 = vector.load %arg1[%c0_105, %c0_106, %c92] : memref<1x8x96xf32, #tpu.memory_space<vmem>>, vector<1x8x4xf32>
    %176 = vector.shape_cast %175 : vector<1x8x4xf32> to vector<8x4xf32>
    %cst_107 = arith.constant dense<0.000000e+00> : vector<8x4xf32>
    %177 = tpu.matmul %172, %176, %cst_107 {dimension_numbers = #tpu.dot_dimension_numbers<[1], [0], [0], [1], [0, 0, 1, 1], [], []>} : vector<8x8xf32>, vector<8x4xf32>, vector<8x4xf32> -> vector<8x4xf32>
    %178 = tpu.reciprocal %174 {approx = true} : vector<8x1xf32> -> vector<8x1xf32>
    %179 = vector.broadcast %178 : vector<8x1xf32> to vector<8x4xf32>
    %180 = arith.mulf %177, %179 : vector<8x4xf32>
    %c0_108 = arith.constant 0 : index
    %c0_109 = arith.constant 0 : index
    %c28_110 = arith.constant 28 : index
    %181 = vector.load %arg2[%c0_108, %c0_109, %c28_110] : memref<1x8x32xf32, #tpu.memory_space<vmem>>, vector<1x8x4xf32>
    %182 = vector.shape_cast %181 : vector<1x8x4xf32> to vector<8x4xf32>
    %183 = vector.shape_cast %180 : vector<8x4xf32> to vector<1x8x4xf32>
    tpu.vector_store %arg2[%c0_108, %c0_109, %c28_110], %183 {strides = array<i32>} : memref<1x8x32xf32, #tpu.memory_space<vmem>>, vector<1x8x4xf32>,
    return
  }
  func.func @transform_0(%arg0: i32) -> (i32, i32, i32) {
    %c0_i32 = arith.constant 0 : i32
    %c0_i32_0 = arith.constant 0 : i32
    %c0_i32_1 = arith.constant 0 : i32
    return %arg0, %c0_i32, %c0_i32_0 : i32, i32, i32
  }
  func.func @transform_1(%arg0: i32) -> (i32, i32, i32) {
    %c0_i32 = arith.constant 0 : i32
    %c0_i32_0 = arith.constant 0 : i32
    %c0_i32_1 = arith.constant 0 : i32
    return %arg0, %c0_i32, %c0_i32_0 : i32, i32, i32
  }
}

</mosaic_0001>

<bundles_post_ra>
// kernel: attention_forward.5
= control target key start
LH: loop header
LB: loop body
LE: loop exit
PB: predicated region body
PF: predicated region fallthrough
CT: control target
= control target key end

     0   :  { %vm28_vm0 = vcmask 261120   ;;  %s243_s0 = inlined_call_operand.vmem [shape: f32[16,32], index: 0, kind: input, shape index: {}]   ;;  %s244_s1 = inlined_call_operand.vmem [shape: f32[32,32], index: 1, kind: input, shape index: {}]   ;;  %s245_s2 = inlined_call_operand.vmem [shape: f32[1,32], index: 2, kind: input, shape index: {}]   ;;  %s246_s3 = inlined_call_operand.hbm [shape: f32[16,32], index: 3, kind: output, shape index: {}]  }
   0x1   :  { %v17_v0 = vld [vmem:[%s244_s1] sm:$0xff]  ;;  %v18_v1 = vld [vmem:[%s244_s1 + $0x8] sm:$0xff]  ;;  %v19_v2 = vld [vmem:[%s244_s1 + $0x10] sm:$0xff] }
   0x2   :  { %v148_v3 = vpack.c.bf16 %v18_v1, %v17_v0  ;;  %v20_v4 = vld [vmem:[%s244_s1 + $0x18] sm:$0xff]  ;;  %v15_v5 = vld [vmem:[%s243_s0] sm:$0xff] }
   0x3   :  { %v152_v6 = vpack.c.bf16 %v20_v4, %v19_v2  ;;  %145 = vmatprep.mubr.msk.f32.mxu0 %vm28_vm0, %v15_v5 }
   0x4   :  { %8 = vsyncpa [#allocation3], 0  ;;  %149 = vmatprep.subr.bf16.mxu0 %v148_v3  ;;  %v16_v7 = vld [vmem:[%s243_s0 + $0x8] sm:$0xff]  ;;  %v128_v8 = vld [vmem:[%s245_s2] ss:$0 sm:$0xff]  ;;  %s183_s25 = smov [#allocation2]  }
   0x5   :  { %151 = vmatpush3.bf16.msra.mxu0 %v148_v3  ;;  %s117_s26 = sshll.u32 %s183_s25, 4  ;;  %s118_s26 = int_to_ptr.vmem [resolvable:$true] %s117_s26 }
   0x6   :  { %153 = vmatprep.subr.bf16.mxu0 %v152_v6  ;;  %s159_s27 = scalar_lea.vmem %s118_s26, 256  ;;  %p164_p1 = scmp.lt.s32.totalorder %s118_s26, %s118_s26 }
   0x7   :  { %p160_p0 = scmp.ne.s32.totalorder %s118_s26, %s159_s27  ;;  %p165_p2 = scmp.lt.s32.totalorder %s159_s27, %s159_s27 }
   0x9   :  { %155 = vmatpush3.bf16.msra.mxu0 %v152_v6  ;;  %p166_p3 = por %p165_p2, %p164_p1 }
   0xb   :  { %p167_p4 = pnand %p166_p3, %p160_p0 }
   0xc   :  { %146 = vmatmul.mubr.msk.f32.vlgmr.msra.gmra.mrb[0].mxu0 %vm28_vm0, %v16_v7 }
  0xdf   :  { %v147_v9 = vpop.f32.mrb[0].mxu0 }
  0xe0   :  { %v107_v10 = vadd.f32 %v147_v9, %v128_v8  ;;  %v101_v11 = vpop.f32.mrb[1].mxu0 }
  0xe1   :  { %v102_v12 = vadd.f32 %v128_v8, %v101_v11 }
  0xe2   :  { %111 = vst.msk [vmem:[#allocation2 + $0x8] sm:$0xff] %vm28_vm0, %v107_v10 }
  0xe3   :  { %110 = vst.msk [vmem:[#allocation2] sm:$0xff] %vm28_vm0, %v102_v12 }
  0xe4   :  { %170 = shalt.err (!%p167_p4)
}
  0xe5   :  { %s171_s28 = scalar_lea.hbm %s246_s3, 256 }
  0xe6   :  { %p172_p5 = scmp.ne.s32.totalorder %s246_s3, %s171_s28  ;;  %p175_p6 = scmp.lt.u32.totalorder %s171_s28, %s246_s3 }
  0xe8   :  { %p177_p7 = pnand %p175_p6, %p172_p5 }
  0xea   :  { %180 = shalt.err (!%p177_p7)
}
  0xeb   :  { %s184_s6 = smov 128   ;;  %s185_s7 = smov 8  }
  0xec   :  { %123 = dma.vmem_to_hbm [thread:$0]  %s118_s26, 256, %s246_s3, [#allocation3], %s184_s6, %s184_s6, %s185_s7  }
  0xed   :  { %181 = dma.done.wait [#allocation3], 256  }
  0xee   :  { %182 = vsyncadd [#allocation3], 4294967040 }
  0xef   :  { %127 = vsyncpa [#allocation3], 1 }

// kernel: attention_forward.3
= control target key start
LH: loop header
LB: loop body
LE: loop exit
PB: predicated region body
PF: predicated region fallthrough
CT: control target
= control target key end

     0   :  { %7 = vsyncpa [#allocation3], 0  ;;  %s264_s0 = inlined_call_operand.hbm [shape: f32[16,32], index: 0, kind: input, shape index: {}]   ;;  %s265_s1 = inlined_call_operand.hbm [shape: f32[32,96], index: 1, kind: input, shape index: {}]   ;;  %s266_s2 = inlined_call_operand.vmem [shape: f32[16,96], index: 2, kind: output, shape index: {}]  }
   0x1   :  { %8 = vsyncpa [#allocation5], 0  ;;  %s215_s9 = smov [#allocation2]   ;;  %s167_s13 = scalar_lea.hbm %s264_s0, 256 }
   0x2   :  { %s14_s10 = sshll.u32 %s215_s9, 4  ;;  %p168_p0 = scmp.ne.s32.totalorder %s264_s0, %s167_s13  ;;  %s15_s10 = int_to_ptr.vmem [resolvable:$true] %s14_s10 }
   0x3   :  { %p171_p1 = scmp.lt.u32.totalorder %s167_s13, %s264_s0 }
   0x5   :  { %p173_p2 = pnand %p171_p1, %p168_p0 }
   0x7   :  { %176 = shalt.err (!%p173_p2)
}
   0x8   :  { %s177_s18 = scalar_lea.vmem %s15_s10, 256  ;;  %p182_p4 = scmp.lt.s32.totalorder %s15_s10, %s15_s10 }
   0x9   :  { %p178_p3 = scmp.ne.s32.totalorder %s15_s10, %s177_s18  ;;  %p183_p5 = scmp.lt.s32.totalorder %s177_s18, %s177_s18 }
   0xb   :  { %p184_p6 = por %p183_p5, %p182_p4 }
   0xd   :  { %p185_p7 = pnand %p184_p6, %p178_p3 }
   0xf   :  { %188 = shalt.err (!%p185_p7)
}
  0x10   :  { %s216_s19 = smov 128   ;;  %s217_s20 = smov 8  }
  0x11   :  { %20 = dma.hbm_to_vmem [thread:$0]  %s264_s0, 256, %s15_s10, [#allocation3], %s216_s19, %s216_s19, %s217_s20  }
  0x12   :  { %s218_s23 = smov [#allocation4]   ;;  %s189_s27 = scalar_lea.hbm %s265_s1, 512 }
  0x13   :  { %s26_s24 = sshll.u32 %s218_s23, 4  ;;  %p190_p8 = scmp.ne.s32.totalorder %s265_s1, %s189_s27  ;;  %s27_s24 = int_to_ptr.vmem [resolvable:$true] %s26_s24 }
  0x14   :  { %p193_p9 = scmp.lt.u32.totalorder %s189_s27, %s265_s1 }
  0x16   :  { %p195_p10 = pnand %p193_p9, %p190_p8 }
  0x18   :  { %198 = shalt.err (!%p195_p10)
}
  0x19   :  { %s199_s4 = scalar_lea.vmem %s27_s24, 512  ;;  %p204_p12 = scmp.lt.s32.totalorder %s27_s24, %s27_s24 }
  0x1a   :  { %p200_p11 = scmp.ne.s32.totalorder %s27_s24, %s199_s4  ;;  %p205_p13 = scmp.lt.s32.totalorder %s199_s4, %s199_s4 }
  0x1c   :  { %p206_p0 = por %p205_p13, %p204_p12 }
  0x1e   :  { %p207_p1 = pnand %p206_p0, %p200_p11 }
  0x20   :  { %210 = shalt.err (!%p207_p1)
}
  0x21   :  { %32 = dma.hbm_to_vmem [thread:$0]  %s265_s1, 512, %s27_s24, [#allocation5], %s216_s19, %s216_s19, %s217_s20  }
  0x22   :  { %211 = dma.done.wait [#allocation3], 256  }
  0x23   :  { %212 = vsyncadd [#allocation3], 4294967040 }
  0x24   :  { %213 = dma.done.wait [#allocation5], 512  }
  0x25   :  { %214 = vsyncadd [#allocation5], 4294966784  ;;  %vm45_vm0 = vcmask 261120   ;;  %v41_v0 = vld [vmem:[#allocation4] sm:$0xff]  ;;  %v42_v1 = vld [vmem:[#allocation4 + $0x8] sm:$0xff]  ;;  %vm127_vm1 = vcmask 785408  }
  0x26   :  { %v43_v2 = vld [vmem:[#allocation4 + $0x10] sm:$0xff]  ;;  %v155_v3 = vpack.c.bf16 %v42_v1, %v41_v0  ;;  %v44_v4 = vld [vmem:[#allocation4 + $0x18] sm:$0xff] }
  0x27   :  { %v39_v5 = vld [vmem:[#allocation2] sm:$0xff]  ;;  %v159_v6 = vpack.c.bf16 %v44_v4, %v43_v2  ;;  %v40_v7 = vld [vmem:[#allocation2 + $0x8] sm:$0xff] }
  0x28   :  { %152 = vmatprep.mubr.msk.f32.mxu0 %vm45_vm0, %v39_v5  ;;  %156 = vmatprep.subr.bf16.mxu0 %v155_v3 }
  0x29   :  { %158 = vmatpush3.bf16.msra.mxu0 %v155_v3 }
  0x2a   :  { %160 = vmatprep.subr.bf16.mxu0 %v159_v6 }
  0x2d   :  { %162 = vmatpush3.bf16.msra.mxu0 %v159_v6 }
  0x30   :  { %153 = vmatmul.mubr.msk.f32.vlgmr.msra.gmra.mrb[0].mxu0 %vm45_vm0, %v40_v7 }
 0x103   :  { %v154_v8 = vpop.f32.mrb[0].mxu0 }
 0x104   :  { %129 = vst.msk [vmem:[%s266_s2 + $0x8] sm:$0xff] %vm127_vm1, %v154_v8  ;;  %v118_v9 = vpop.f32.mrb[1].mxu0 }
 0x105   :  { %128 = vst.msk [vmem:[%s266_s2] sm:$0xff] %vm127_vm1, %v118_v9 }
 0x106   :  { %134 = vsyncpa [#allocation3], 1 }
 0x107   :  { %135 = vsyncpa [#allocation5], 1 }

// kernel: attention_forward.4
= control target key start
LH: loop header
LB: loop body
LE: loop exit
PB: predicated region body
PF: predicated region fallthrough
CT: control target
= control target key end

     0   :  { %s1827_s6 = smov 0   ;;  %s1988_s0 = inlined_call_operand.vmem [shape: f32[2,8,96], index: 0, kind: input, shape index: {}]   ;;  %s1989_s1 = inlined_call_operand.vmem [shape: f32[2,8,32], index: 1, kind: output, shape index: {}]  }
   0x1 LB: > { %s1560_s7 = sadd.s32 4294967295, %s1783_s6   ;;  %p1564_p0 = scmp.ge.s32.totalorder %s1783_s6, 1  ;;  %s1783_s6 = sphi %s1827_s6, %s11_s6  }
   0x2   : > { %p86_p1 = scmp.lt.s32.totalorder %s1783_s6, 3 }
   0x4   : > { %p87_p2 = pnand %p1564_p0, %p86_p1 }
   0x5   : > { %p104_p3 = scmp.lt.s32.totalorder (!%p87_p2), %s1560_s7, 1  ;;  %v1785_v0 = vmov (!%p87_p2), 0.0   ;;  %vm1786_vm0 = vmmov (!%p87_p2), 0   ;;  %s1787_s12 = smov (!%p87_p2), 96   ;;  %vm117_vm1 = vcmask (!%p87_p2), 31744   ;;  %vm193_vm2 = vcmask (!%p87_p2), 64512  }
   0x6   : > { %90 = sbr.rel (%p87_p2) target bundleno = 1395 (0x573), region = 24  ;;  %1625 = vmatprep.subr.mxu0 (!%p87_p2), %v1785_v0  ;;  %1627 = vmatprep.mubr.msk.f32.mxu0 (!%p87_p2), %vm1786_vm0, %v1785_v0  ;;  %s1788_s13 = smov (!%p87_p2), 64   ;;  %vm455_vm3 = vcmask (!%p87_p2), 64544   ;;  %vm630_vm4 = vcmask (!%p87_p2), 97344   ;;  %vm805_vm5 = vcmask (!%p87_p2), 130144   ;;  %vm980_vm6 = vcmask (!%p87_p2), 162944  }
   0x7   : > { %1630 = vmatprep.subr.mxu1 (!%p87_p2), %v1785_v0  ;;  %1632 = vmatprep.mubr.msk.f32.mxu1 (!%p87_p2), %vm1786_vm0, %v1785_v0  ;;  %s1789_s14 = smov (!%p87_p2), 92   ;;  %s1790_s15 = smov (!%p87_p2), 124   ;;  %vm1155_vm7 = vcmask (!%p87_p2), 195744   ;;  %vm1330_vm8 = vcmask (!%p87_p2), 228544   ;;  %vm1505_vm9 = vcmask (!%p87_p2), 261344  }
   0x8   : > { %s1791_s16 = smov (!%p87_p2), 88   ;;  %s1792_s17 = smov (!%p87_p2), 120  }
   0x9   : > { %s1793_s18 = smov (!%p87_p2), 84   ;;  %s1794_s19 = smov (!%p87_p2), 116  }
   0xa   : > { %s1795_s20 = smov (!%p87_p2), 80   ;;  %s1796_s21 = smov (!%p87_p2), 112  }
   0xb   : > { %s1797_s22 = smov (!%p87_p2), 108   ;;  %s1798_s23 = smov (!%p87_p2), 72  }
   0xc   : > { %s1799_s24 = smov (!%p87_p2), 104   ;;  %s1800_s25 = smov (!%p87_p2), 68  }
   0xd   : > { %s1991_s7 = smov (!%p104_p3, %s1560_s7), 1  ;;  %s1801_s26 = smov 100  }
   0xe   : > { %s1565_s8 = sshll.u32 %s1991_s7, 3  ;;  %s1802_s27 = smov 76  }
   0xf   : > { %s107_s11 = scalar_lea.vmem %s1988_s0, %s1565_s8  ;;  %s1803_s28 = smov 56  }
  0x10   : > { %v1849_v1 = vld [vmem:[%s107_s11] sm:$0xff]  ;;  %s1804_s29 = smov 60   ;;  %s1805_s30 = smov 52  }
  0x11   : > { %115 = vrot.lane.b32.xlu0 %v1849_v1, %s1787_s12  ;;  %v113_v2 = vmul.f32 0.5, %v1849_v1  ;;  %203 = vrot.lane.b32.xlu1 %v1849_v1, %s1788_s13  ;;  %s1806_s2 = smov 48   ;;  %s1807_s3 = smov 44  }
  0x12   : > { %s1808_s4 = smov 36   ;;  %s1809_s5 = smov 40  }
  0x13   : > { %s1972_s11 = scalar_lea.vmem %s1989_s1, %s1565_s8  ;;  %s1810_s7 = smov 4  }
  0x14   : > { %s1811_s8 = smov 8   ;;  %s1812_s12 = smov 12  }
  0x15   : > { %288 = vrot.lane.b32.xlu1 %v1849_v1, %s1789_s14  ;;  %s1813_s13 = smov 16   ;;  %s1814_s14 = smov 20  }
  0x19   : > { %285 = vrot.lane.b32.xlu1 %v113_v2, %s1790_s15  ;;  %s1815_s15 = smov 24  }
  0x1d   : > { %463 = vrot.lane.b32.xlu1 %v1849_v1, %s1791_s16  ;;  %s1816_s16 = smov 28  }
  0x21   : > { %460 = vrot.lane.b32.xlu1 %v113_v2, %s1792_s17 }
  0x25   : > { %638 = vrot.lane.b32.xlu1 %v1849_v1, %s1793_s18 }
  0x29   : > { %635 = vrot.lane.b32.xlu1 %v113_v2, %s1794_s19 }
  0x2d   : > { %813 = vrot.lane.b32.xlu1 %v1849_v1, %s1795_s20 }
  0x31   : > { %810 = vrot.lane.b32.xlu1 %v113_v2, %s1796_s21 }
  0x35   : > { %985 = vrot.lane.b32.xlu1 %v113_v2, %s1797_s22 }
  0x39   : > { %1163 = vrot.lane.b32.xlu1 %v1849_v1, %s1798_s23 }
  0x3d   : > { %1160 = vrot.lane.b32.xlu1 %v113_v2, %s1799_s24 }
  0x41   : > { %1338 = vrot.lane.b32.xlu1 %v1849_v1, %s1800_s25 }
  0x45   : > { %1335 = vrot.lane.b32.xlu1 %v113_v2, %s1801_s26 }
  0x49   : > { %548 = vrot.lane.b32.xlu1 %v1849_v1, %s1803_s28 }
  0x4d   : > { %723 = vrot.lane.b32.xlu1 %v1849_v1, %s1805_s30 }
  0x83   : > { %v116_v3 = vpop.permute.xlu0 %115  ;;  %v204_v4 = vpop.permute.xlu1 %203 }
  0x84   : > { %1626 = vmatpush3.xpose.msk.msra.mxu0 %vm117_vm1, %v116_v3  ;;  %1631 = vmatpush3.msra.mxu1 %v204_v4 }
  0x85   : > { %1640 = vmatprep.subr.mxu0 %v1785_v0  ;;  %1635 = vmatprep.subr.mxu1 %v1785_v0 }
  0x87   : > { %1628 = vmatmul.mubr.msk.f32.vlgmr.msra.gmra.mrb[0].mxu0 %vm117_vm1, %v113_v2  ;;  %v289_v8 = vpop.permute.xlu1 %288 }
  0x88   : > { %1642 = vmatprep.mubr.msk.f32.mxu0 %vm1786_vm0, %v1785_v0 }
  0x8b   : > { %v286_v9 = vpop.permute.xlu1 %285 }
  0x8f   : > { %v464_v10 = vpop.permute.xlu1 %463 }
  0x93   : > { %v461_v11 = vpop.permute.xlu1 %460 }
  0x97   : > { %v639_v12 = vpop.permute.xlu1 %638 }
  0x9b   : > { %v636_v15 = vpop.permute.xlu1 %635 }
  0x9f   : > { %v814_v17 = vpop.permute.xlu1 %813 }
  0xa3   : > { %v811_v18 = vpop.permute.xlu1 %810 }
  0xa7   : > { %v986_v20 = vpop.permute.xlu1 %985 }
  0xab   : > { %v1164_v21 = vpop.permute.xlu1 %1163 }
  0xaf   : > { %v1161_v23 = vpop.permute.xlu1 %1160 }
  0xb3   : > { %v1339_v24 = vpop.permute.xlu1 %1338 }
  0xb7   : > { %v1336_v25 = vpop.permute.xlu1 %1335 }
  0xbb   : > { %v549_v51 = vpop.permute.xlu1 %548 }
  0xbf   : > { %v724_v52 = vpop.permute.xlu1 %723 }
 0x15a   : > { %v189_v5 = vpop.f32.mrb[0].mxu0 }
 0x15b   : > { %v1629_v6 = vpop.f32.mrb[1].mxu0  ;;  %v194_v7 = vsel %vm193_vm2, %v189_v5, -inf }
 0x15c   : > { %195 = vmax.xlane.f32.xlu0 %v194_v7 }
 0x172   : > { %988 = vrot.lane.b32.xlu0 %v1849_v1, %s1802_s27 }
 0x176   : > { %373 = vrot.lane.b32.xlu0 %v1849_v1, %s1804_s29 }
 0x1e9   : > { %v196_v13 = vpop.xlane.xlu0 %195 }
 0x1ea   : > { %v197_v14 = vsub.f32 %v189_v5, %v196_v13 }
 0x1ec   : > { %v198_v16 = vmul.f32 1.442695, %v197_v14 }
 0x1ed   : > { %v989_v22 = vpop.permute.xlu0 %988 }
 0x1ee   : > { %1745 = vpow2.f32 %v198_v16 }
 0x1f1   : > { %v374_v41 = vpop.permute.xlu0 %373 }
 0x1f2   : > { %1641 = vmatpush3.msra.mxu0 %v374_v41 }
 0x1f3   : > { %1650 = vmatprep.subr.mxu0 %v1785_v0 }
 0x1f8   : > { %v1871_v19 = vpop.eup %1745 }
 0x1f9   : > { %1633 = vmatmul.mubr.msk.f32.vlgmr.msra.gmra.mrb[0].mxu1 %vm193_vm2, %v1871_v19  ;;  %v200_v50 = vsel %vm193_vm2, %v1871_v19, 0.0 }
 0x1fa   : > { %1636 = vmatpush3.xpose.msk.msra.mxu1 %vm117_vm1, %v289_v8  ;;  %1637 = vmatprep.mubr.msk.f32.mxu1 %vm1786_vm0, %v1785_v0 }
 0x1fb   : > { %1645 = vmatprep.subr.mxu1 %v1785_v0 }
 0x1fd   : > { %1638 = vmatmul.mubr.msk.f32.vlgmr.msra.gmra.mrb[2].mxu1 %vm117_vm1, %v286_v9 }
 0x1fe   : > { %1646 = vmatpush3.xpose.msk.msra.mxu1 %vm117_vm1, %v464_v10  ;;  %1647 = vmatprep.mubr.msk.f32.mxu1 %vm1786_vm0, %v1785_v0 }
 0x1ff   : > { %1655 = vmatprep.subr.mxu1 %v1785_v0 }
 0x201   : > { %1648 = vmatmul.mubr.msk.f32.vlgmr.msra.gmra.mrb[4].mxu1 %vm117_vm1, %v461_v11 }
 0x202   : > { %1656 = vmatpush3.xpose.msk.msra.mxu1 %vm117_vm1, %v639_v12  ;;  %1657 = vmatprep.mubr.msk.f32.mxu1 %vm1786_vm0, %v1785_v0 }
 0x203   : > { %1665 = vmatprep.subr.mxu1 %v1785_v0 }
 0x205   : > { %1658 = vmatmul.mubr.msk.f32.vlgmr.msra.gmra.mrb[6].mxu1 %vm117_vm1, %v636_v15 }
 0x206   : > { %1666 = vmatpush3.xpose.msk.msra.mxu1 %vm117_vm1, %v814_v17  ;;  %1667 = vmatprep.mubr.msk.f32.mxu1 %vm1786_vm0, %v1785_v0 }
 0x207   : > { %1675 = vmatprep.subr.mxu1 %v1785_v0 }
 0x209   : > { %1668 = vmatmul.mubr.msk.f32.vlgmr.msra.gmra.mrb[8].mxu1 %vm117_vm1, %v811_v18 }
 0x20a   : > { %1676 = vmatpush3.xpose.msk.msra.mxu1 %vm117_vm1, %v989_v22  ;;  %1677 = vmatprep.mubr.msk.f32.mxu1 %vm1786_vm0, %v1785_v0 }
 0x20b   : > { %1685 = vmatprep.subr.mxu1 %v1785_v0 }
 0x20d   : > { %1678 = vmatmul.mubr.msk.f32.vlgmr.msra.gmra.mrb[10].mxu1 %vm117_vm1, %v986_v20 }
 0x20e   : > { %1686 = vmatpush3.xpose.msk.msra.mxu1 %vm117_vm1, %v1164_v21  ;;  %1687 = vmatprep.mubr.msk.f32.mxu1 %vm1786_vm0, %v1785_v0 }
 0x20f   : > { %1695 = vmatprep.subr.mxu1 %v1785_v0 }
 0x211   : > { %1688 = vmatmul.mubr.msk.f32.vlgmr.msra.gmra.mrb[12].mxu1 %vm117_vm1, %v1161_v23 }
 0x212   : > { %1696 = vmatpush3.xpose.msk.msra.mxu1 %vm117_vm1, %v1339_v24  ;;  %1697 = vmatprep.mubr.msk.f32.mxu1 %vm1786_vm0, %v1785_v0 }
 0x215   : > { %1698 = vmatmul.mubr.msk.f32.vlgmr.msra.gmra.mrb[14].mxu1 %vm117_vm1, %v1336_v25 }
 0x2cc   : > { %v1909_v26 = vpop.f32.mrb[0].mxu1 }
 0x2cd   : > { %v1634_v27 = vpop.f32.mrb[1].mxu1 }
 0x2d0   : > { %v360_v28 = vpop.f32.mrb[2].mxu1 }
 0x2d1   : > { %v1639_v29 = vpop.f32.mrb[3].mxu1  ;;  %v364_v30 = vsel %vm193_vm2, %v360_v28, -inf }
 0x2d2   : > { %365 = vmax.xlane.f32.xlu1 %v364_v30 }
 0x2d4   : > { %v535_v31 = vpop.f32.mrb[4].mxu1 }
 0x2d5   : > { %v539_v32 = vsel %vm193_vm2, %v535_v31, -inf  ;;  %v1649_v33 = vpop.f32.mrb[5].mxu1 }
 0x2d6   : > { %540 = vmax.xlane.f32.xlu0 %v539_v32 }
 0x2d8   : > { %v710_v34 = vpop.f32.mrb[6].mxu1 }
 0x2d9   : > { %v714_v35 = vsel %vm193_vm2, %v710_v34, -inf  ;;  %v1659_v36 = vpop.f32.mrb[7].mxu1 }
 0x2da   : > { %715 = vmax.xlane.f32.xlu0 %v714_v35 }
 0x2dc   : > { %v885_v37 = vpop.f32.mrb[8].mxu1 }
 0x2dd   : > { %v889_v38 = vsel %vm193_vm2, %v885_v37, -inf  ;;  %v1669_v39 = vpop.f32.mrb[9].mxu1 }
 0x2de   : > { %890 = vmax.xlane.f32.xlu0 %v889_v38 }
 0x2e0   : > { %v1915_v40 = vpop.f32.mrb[10].mxu1 }
 0x2e1   : > { %v1679_v42 = vpop.f32.mrb[11].mxu1  ;;  %v1064_v48 = vsel %vm193_vm2, %v1915_v40, -inf }
 0x2e3   : > { %898 = vrot.lane.b32.xlu1 %v1849_v1, %s1806_s2 }
 0x2e4   : > { %v1919_v43 = vpop.f32.mrb[12].mxu1 }
 0x2e5   : > { %v1239_v44 = vsel %vm193_vm2, %v1919_v43, -inf  ;;  %v1689_v45 = vpop.f32.mrb[13].mxu1 }
 0x2e6   : > { %1240 = vmax.xlane.f32.xlu0 %v1239_v44 }
 0x2e8   : > { %v1923_v46 = vpop.f32.mrb[14].mxu1 }
 0x2e9   : > { %v1699_v47 = vpop.f32.mrb[15].mxu1  ;;  %v1414_v49 = vsel %vm193_vm2, %v1923_v46, -inf }
 0x2fc   : > { %1073 = vrot.lane.b32.xlu0 %v1849_v1, %s1807_s3 }
 0x300   : > { %1423 = vrot.lane.b32.xlu0 %v1849_v1, %s1808_s4 }
 0x307   : > { %1065 = vmax.xlane.f32.xlu1 %v1064_v48 }
 0x30b   : > { %1415 = vmax.xlane.f32.xlu1 %v1414_v49 }
 0x31c   : > { %1248 = vrot.lane.b32.xlu1 %v1849_v1, %s1809_s5 }
 0x340   : > { %201 = vadd.xlane.f32.xlu1 %v200_v50 }
 0x35f   : > { %v366_v53 = vpop.xlane.xlu1 %365 }
 0x360   : > { %v367_v54 = vsub.f32 %v360_v28, %v366_v53 }
 0x362   : > { %v368_v55 = vmul.f32 1.442695, %v367_v54 }
 0x363   : > { %v541_v56 = vpop.xlane.xlu0 %540  ;;  %v899_v7 = vpop.permute.xlu1 %898 }
 0x364   : > { %1747 = vpow2.f32 %v368_v55  ;;  %v542_v57 = vsub.f32 %v535_v31, %v541_v56 }
 0x366   : > { %v543_v58 = vmul.f32 1.442695, %v542_v57 }
 0x367   : > { %v716_v59 = vpop.xlane.xlu0 %715 }
 0x368   : > { %1749 = vpow2.f32 %v543_v58  ;;  %v717_v60 = vsub.f32 %v710_v34, %v716_v59 }
 0x36a   : > { %v718_v61 = vmul.f32 1.442695, %v717_v60 }
 0x36b   : > { %v891_v62 = vpop.xlane.xlu0 %890 }
 0x36c   : > { %1751 = vpow2.f32 %v718_v61  ;;  %v892_v63 = vsub.f32 %v885_v37, %v891_v62 }
 0x36e   : > { %v1748_v1 = vpop.eup %1747  ;;  %v893_v2 = vmul.f32 1.442695, %v892_v63 }
 0x36f   : > { %1643 = vmatmul.mubr.msk.f32.vlgmr.msra.gmra.mrb[2].mxu0 %vm193_vm2, %v1748_v1  ;;  %v370_v3 = vsel %vm193_vm2, %v1748_v1, 0.0 }
 0x370   : > { %1753 = vpow2.f32 %v893_v2  ;;  %1651 = vmatpush3.msra.mxu0 %v549_v51  ;;  %371 = vadd.xlane.f32.xlu0 %v370_v3 }
 0x371   : > { %1652 = vmatprep.mubr.msk.f32.mxu0 %vm1786_vm0, %v1785_v0  ;;  %1660 = vmatprep.subr.mxu0 %v1785_v0 }
 0x372   : > { %v1750_v4 = vpop.eup %1749 }
 0x373   : > { %1653 = vmatmul.mubr.msk.f32.vlgmr.msra.gmra.mrb[4].mxu0 %vm193_vm2, %v1750_v4  ;;  %v545_v5 = vsel %vm193_vm2, %v1750_v4, 0.0  ;;  %v1241_v6 = vpop.xlane.xlu0 %1240 }
 0x374   : > { %1661 = vmatpush3.msra.mxu0 %v724_v52  ;;  %546 = vadd.xlane.f32.xlu1 %v545_v5  ;;  %v1242_v13 = vsub.f32 %v1919_v43, %v1241_v6 }
 0x375   : > { %1662 = vmatprep.mubr.msk.f32.mxu0 %vm1786_vm0, %v1785_v0  ;;  %1670 = vmatprep.subr.mxu0 %v1785_v0 }
 0x376   : > { %v1752_v8 = vpop.eup %1751  ;;  %v1243_v16 = vmul.f32 1.442695, %v1242_v13 }
 0x377   : > { %1663 = vmatmul.mubr.msk.f32.vlgmr.msra.gmra.mrb[6].mxu0 %vm193_vm2, %v1752_v8  ;;  %v720_v9 = vsel %vm193_vm2, %v1752_v8, 0.0  ;;  %v1074_v10 = vpop.permute.xlu0 %1073 }
 0x378   : > { %721 = vadd.xlane.f32.xlu1 %v720_v9  ;;  %1671 = vmatpush3.msra.mxu0 %v899_v7 }
 0x379   : > { %1672 = vmatprep.mubr.msk.f32.mxu0 %vm1786_vm0, %v1785_v0  ;;  %1680 = vmatprep.subr.mxu0 %v1785_v0 }
 0x37a   : > { %v1754_v11 = vpop.eup %1753 }
 0x37b   : > { %1673 = vmatmul.mubr.msk.f32.vlgmr.msra.gmra.mrb[8].mxu0 %vm193_vm2, %v1754_v11  ;;  %v895_v12 = vsel %vm193_vm2, %v1754_v11, 0.0  ;;  %v1424_v25 = vpop.permute.xlu0 %1423 }
 0x37c   : > { %896 = vadd.xlane.f32.xlu1 %v895_v12  ;;  %1681 = vmatpush3.msra.mxu0 %v1074_v10 }
 0x37d   : > { %1682 = vmatprep.mubr.msk.f32.mxu0 %vm1786_vm0, %v1785_v0  ;;  %1690 = vmatprep.subr.mxu0 %v1785_v0 }
 0x394   : > { %v1066_v14 = vpop.xlane.xlu1 %1065 }
 0x395   : > { %v1067_v15 = vsub.f32 %v1915_v40, %v1066_v14 }
 0x397   : > { %v1068_v17 = vmul.f32 1.442695, %v1067_v15 }
 0x398   : > { %v1416_v18 = vpop.xlane.xlu1 %1415 }
 0x399   : > { %1755 = vpow2.f32 %v1068_v17  ;;  %v1417_v19 = vsub.f32 %v1923_v46, %v1416_v18 }
 0x39a   : > { %1757 = vpow2.f32 %v1243_v16 }
 0x39b   : > { %v1418_v20 = vmul.f32 1.442695, %v1417_v19 }
 0x39c   : > { %v1249_v21 = vpop.permute.xlu1 %1248 }
 0x39d   : > { %1759 = vpow2.f32 %v1418_v20 }
 0x3a3   : > { %v1756_v22 = vpop.eup %1755 }
 0x3a4   : > { %1683 = vmatmul.mubr.msk.f32.vlgmr.msra.gmra.mrb[10].mxu0 %vm193_vm2, %v1756_v22  ;;  %v1070_v23 = vsel %vm193_vm2, %v1756_v22, 0.0  ;;  %v1758_v24 = vpop.eup %1757 }
 0x3a5   : > { %1071 = vadd.xlane.f32.xlu1 %v1070_v23  ;;  %1691 = vmatpush3.msra.mxu0 %v1249_v21  ;;  %v1245_v27 = vsel %vm193_vm2, %v1758_v24, 0.0 }
 0x3a6   : > { %1692 = vmatprep.mubr.msk.f32.mxu0 %vm1786_vm0, %v1785_v0  ;;  %1700 = vmatprep.subr.mxu0 %v1785_v0 }
 0x3a7   : > { %v1760_v28 = vpop.eup %1759 }
 0x3a8   : > { %1693 = vmatmul.mubr.msk.f32.vlgmr.msra.gmra.mrb[12].mxu0 %vm193_vm2, %v1758_v24  ;;  %v1420_v50 = vsel %vm193_vm2, %v1760_v28, 0.0 }
 0x3a9   : > { %1246 = vadd.xlane.f32.xlu1 %v1245_v27  ;;  %1701 = vmatpush3.msra.mxu0 %v1424_v25 }
 0x3aa   : > { %1702 = vmatprep.mubr.msk.f32.mxu0 %vm1786_vm0, %v1785_v0 }
 0x3ac   : > { %1703 = vmatmul.mubr.msk.f32.vlgmr.msra.gmra.mrb[14].mxu0 %vm193_vm2, %v1760_v28 }
 0x3cd   : > { %v202_v29 = vpop.xlane.xlu1 %201 }
 0x3ce   : > { %1761 = vrcp.f32 %v202_v29 }
 0x3d8   : > { %v1762_v30 = vpop.eup %1761 }
 0x3d9   : > { %v280_v31 = vmul.f32 %v1762_v30, %v1909_v26 }
 0x3db   : > { %281 = vst.msk [vmem:[%s1972_s11] sm:$0xff] %vm117_vm1, %v280_v31 }
 0x3fd   : > { %v372_v32 = vpop.xlane.xlu0 %371 }
 0x3fe   : > { %1763 = vrcp.f32 %v372_v32 }
 0x401   : > { %v547_v33 = vpop.xlane.xlu1 %546 }
 0x402   : > { %1765 = vrcp.f32 %v547_v33 }
 0x405   : > { %v722_v0 = vpop.xlane.xlu1 %721 }
 0x406   : > { %1767 = vrcp.f32 %v722_v0 }
 0x408   : > { %v1764_v35 = vpop.eup %1763 }
 0x409   : > { %v897_v34 = vpop.xlane.xlu1 %896 }
 0x40a   : > { %1769 = vrcp.f32 %v897_v34 }
 0x40c   : > { %v1766_v39 = vpop.eup %1765 }
 0x410   : > { %v1768_v42 = vpop.eup %1767 }
 0x414   : > { %v1770_v46 = vpop.eup %1769 }
 0x432   : > { %v1072_v51 = vpop.xlane.xlu1 %1071 }
 0x433   : > { %1771 = vrcp.f32 %v1072_v51 }
 0x436   : > { %v1247_v52 = vpop.xlane.xlu1 %1246 }
 0x437   : > { %1773 = vrcp.f32 %v1247_v52 }
 0x43d   : > { %v1772_v53 = vpop.eup %1771 }
 0x441   : > { %v1774_v57 = vpop.eup %1773 }
 0x442   : > { %v445_v36 = vpop.f32.mrb[2].mxu0 }
 0x443   : > { %v450_v37 = vmul.f32 %v1764_v35, %v445_v36  ;;  %v1644_v38 = vpop.f32.mrb[3].mxu0 }
 0x445   : > { %452 = vrot.lane.b32.xlu0 %v450_v37, %s1810_s7 }
 0x446   : > { %v620_v40 = vpop.f32.mrb[4].mxu0 }
 0x447   : > { %v625_v41 = vmul.f32 %v1766_v39, %v620_v40  ;;  %v1654_v26 = vpop.f32.mrb[5].mxu0 }
 0x449   : > { %627 = vrot.lane.b32.xlu1 %v625_v41, %s1811_s8 }
 0x44a   : > { %v795_v43 = vpop.f32.mrb[6].mxu0 }
 0x44b   : > { %v800_v44 = vmul.f32 %v1768_v42, %v795_v43  ;;  %v1664_v45 = vpop.f32.mrb[7].mxu0 }
 0x44d   : > { %802 = vrot.lane.b32.xlu1 %v800_v44, %s1812_s12 }
 0x44e   : > { %v970_v47 = vpop.f32.mrb[8].mxu0 }
 0x44f   : > { %v975_v48 = vmul.f32 %v1770_v46, %v970_v47  ;;  %v1674_v49 = vpop.f32.mrb[9].mxu0 }
 0x451   : > { %977 = vrot.lane.b32.xlu1 %v975_v48, %s1813_s13 }
 0x464   : > { %1421 = vadd.xlane.f32.xlu0 %v1420_v50 }
 0x477   : > { %v1145_v54 = vpop.f32.mrb[10].mxu0 }
 0x478   : > { %v1150_v55 = vmul.f32 %v1772_v53, %v1145_v54  ;;  %v1684_v56 = vpop.f32.mrb[11].mxu0 }
 0x47a   : > { %1152 = vrot.lane.b32.xlu1 %v1150_v55, %s1814_s14 }
 0x47b   : > { %v1320_v58 = vpop.f32.mrb[12].mxu0 }
 0x47c   : > { %v1325_v59 = vmul.f32 %v1774_v57, %v1320_v58  ;;  %v1694_v60 = vpop.f32.mrb[13].mxu0 }
 0x47e   : > { %1327 = vrot.lane.b32.xlu0 %v1325_v59, %s1815_s15 }
 0x47f   : > { %v1495_v61 = vpop.f32.mrb[14].mxu0 }
 0x480   : > { %v1704_v62 = vpop.f32.mrb[15].mxu0 }
 0x4b7   : > { %v453_v63 = vpop.permute.xlu0 %452 }
 0x4b8   : > { %456 = vst.msk [vmem:[%s1972_s11] sm:$0xff] %vm455_vm3, %v453_v63 }
 0x4bb   : > { %v628_v1 = vpop.permute.xlu1 %627 }
 0x4bc   : > { %631 = vst.msk [vmem:[%s1972_s11] sm:$0xff] %vm630_vm4, %v628_v1 }
 0x4bf   : > { %v803_v2 = vpop.permute.xlu1 %802 }
 0x4c0   : > { %806 = vst.msk [vmem:[%s1972_s11] sm:$0xff] %vm805_vm5, %v803_v2 }
 0x4c3   : > { %v978_v3 = vpop.permute.xlu1 %977 }
 0x4c4   : > { %981 = vst.msk [vmem:[%s1972_s11] sm:$0xff] %vm980_vm6, %v978_v3 }
 0x4ec   : > { %v1153_v4 = vpop.permute.xlu1 %1152 }
 0x4ed   : > { %1156 = vst.msk [vmem:[%s1972_s11] sm:$0xff] %vm1155_vm7, %v1153_v4 }
 0x4f1   : > { %v1422_v5 = vpop.xlane.xlu0 %1421 }
 0x4f2   : > { %1775 = vrcp.f32 %v1422_v5 }
 0x4f5   : > { %v1328_v6 = vpop.permute.xlu0 %1327 }
 0x4f6   : > { %1331 = vst.msk [vmem:[%s1972_s11] sm:$0xff] %vm1330_vm8, %v1328_v6 }
 0x4fc   : > { %v1776_v7 = vpop.eup %1775 }
 0x4fd   : > { %v1500_v8 = vmul.f32 %v1776_v7, %v1495_v61 }
 0x4ff   : > { %1502 = vrot.lane.b32.xlu1 %v1500_v8, %s1816_s16 }
 0x571   : > { %v1503_v9 = vpop.permute.xlu1 %1502 }
 0x572   : > { %1506 = vst.msk [vmem:[%s1972_s11] sm:$0xff] %vm1505_vm9, %v1503_v9 }
 0x573 PF: > { %s11_s6 = sadd.s32 1, %s1783_s6  }
 0x574   : > { %p8_p4 = scmp.ge.s32.totalorder %s11_s6, 4  }
 0x576   :  { %10 = sbr.rel (!%p8_p4) target bundleno = 1 (0x1), region = 54 }

</bundles_post_ra>
